<compile_context>
chip_gen: v5e
topology: v5e:2x2
jax: 0.10.0
libtpu: 0.0.40
codegen_flags: <defaults>
</compile_context>

<pallas_src>
import numpy as np
import jax
import jax.numpy as jnp
from jax import lax
from jax.experimental import pallas as pl
from jax.experimental.pallas import tpu as pltpu

# ---------------- configuration (BasicBlock __init__ arguments) --------------
N = 2              # batch
CIN = 4            # in_channels
COUT = 8           # out_channels
L = 16             # sequence length
K = 3              # kernel_size
STRIDE = 2         # stride (downsample=True -> effective stride = stride)
GROUPS = 1         # TODO(synk): grouped conv (groups > 1) not implemented; block configured with groups=1.
DOWNSAMPLE = True
USE_BN = True
USE_DO = False     # TODO(synk): training-mode dropout (p=0.5) is stochastic; block instantiated with use_do=False.
IS_FIRST_BLOCK = False
EPS = 1e-5

# Derived static geometry (PyTorch MyConv1dPadSame / MyMaxPool1dPadSame semantics)
LOUT1 = (L + STRIDE - 1) // STRIDE
P1 = max(0, (LOUT1 - 1) * STRIDE + K - L)
PL1 = P1 // 2
LOUT2 = LOUT1                          # conv2: stride 1, SAME
P2 = max(0, K - 1)
PL2 = P2 // 2
POOL_K = STRIDE                        # MyMaxPool1dPadSame(kernel_size=self.stride)
P_MP = max(0, POOL_K - 1)
PL_MP = P_MP // 2
LOUT_MP = (L + P_MP - POOL_K) // POOL_K + 1
CH1 = (COUT - CIN) // 2
CH2 = COUT - CIN - CH1
PW = max(CIN, COUT)                    # packed-param row width
W2_OFF = ((K * CIN + 7) // 8) * 8      # sublane-aligned offset of conv2 weights in packed array

assert LOUT2 == LOUT1 and LOUT_MP == LOUT1, "main/residual path lengths must match"


# -------------- host-side 0/1 row-selection constants (built once) -----------
def _tap_matrix(l_out, l_in, stride, offset):
    """S[n*l_out+t, n*l_in + (t*stride+offset)] = 1 when the source index is in
    range; out-of-range rows stay all-zero, reproducing F.pad(..., 'constant', 0)."""
    s = np.zeros((N * l_out, N * l_in), np.float32)
    for n in range(N):
        for t in range(l_out):
            j = t * stride + offset
            if 0 <= j < l_in:
                s[n * l_out + t, n * l_in + j] = 1.0
    return s


_GATH1_NP = np.stack(
    [_tap_matrix(LOUT1, L, STRIDE, k - PL1) for k in range(K)]               # conv1 taps
    + [_tap_matrix(LOUT_MP, L, POOL_K, k - PL_MP) for k in range(POOL_K)])   # maxpool taps
_GATH2_NP = np.stack([_tap_matrix(LOUT2, LOUT1, 1, k - PL2) for k in range(K)])  # conv2 taps


# --------------------------------- kernel ------------------------------------
def basic_block_kernel(x_ref, g1_ref, g2_ref, w_ref, p_ref, out_ref):
    x = x_ref[...]                                        # (N*L, CIN) f32

    # ---- pre-activation: BN1 (training batch stats, single pass) + ReLU1 ----
    out = x
    if not IS_FIRST_BLOCK:
        if USE_BN:
            inv_n = 1.0 / (N * L)
            mu = jnp.sum(out, axis=0, keepdims=True) * inv_n
            var = jnp.sum(out * out, axis=0, keepdims=True) * inv_n - mu * mu
            out = (out - mu) * (lax.rsqrt(var + EPS) * p_ref[0:1, 0:CIN]) + p_ref[1:2, 0:CIN]
        out = jnp.maximum(out, 0.0)                       # relu1 (dropout off: USE_DO=False)

    # ---- conv1 (SAME, stride=STRIDE): constant tap gathers + ONE weight matmul ----
    taps1 = [jnp.dot(g1_ref[k], out, preferred_element_type=jnp.float32) for k in range(K)]
    cols1 = jnp.concatenate(taps1, axis=1)                # (N*LOUT1, K*CIN) im2col
    h = jnp.dot(cols1, w_ref[0:K * CIN, :], preferred_element_type=jnp.float32)
    h = h + p_ref[4:5, 0:COUT]                            # conv1 bias

    # ---- BN2 + ReLU2 ----
    if USE_BN:
        inv_n2 = 1.0 / (N * LOUT1)
        mu2 = jnp.sum(h, axis=0, keepdims=True) * inv_n2
        var2 = jnp.sum(h * h, axis=0, keepdims=True) * inv_n2 - mu2 * mu2
        h = (h - mu2) * (lax.rsqrt(var2 + EPS) * p_ref[2:3, 0:COUT]) + p_ref[3:4, 0:COUT]
    h = jnp.maximum(h, 0.0)                               # relu2

    # ---- conv2 (SAME, stride=1): same im2col scheme, ONE weight matmul ----
    taps2 = [jnp.dot(g2_ref[k], h, preferred_element_type=jnp.float32) for k in range(K)]
    cols2 = jnp.concatenate(taps2, axis=1)                # (N*LOUT2, K*COUT)
    y = jnp.dot(cols2, w_ref[W2_OFF:W2_OFF + K * COUT, :], preferred_element_type=jnp.float32)
    y = y + p_ref[5:6, 0:COUT]                            # conv2 bias

    # ---- identity branch: SAME max-pool (zero padding, matching F.pad(...,0)) ----
    identity = x
    if DOWNSAMPLE:
        pooled = jnp.dot(g1_ref[K], x, preferred_element_type=jnp.float32)
        for k in range(1, POOL_K):
            pooled = jnp.maximum(
                pooled, jnp.dot(g1_ref[K + k], x, preferred_element_type=jnp.float32))
        identity = pooled                                 # (N*LOUT_MP, CIN)

    # ---- zero channel pad (lane concat with zeros, no matmul) + residual add ----
    if COUT != CIN:
        rows = identity.shape[0]
        identity = jnp.concatenate(
            [jnp.zeros((rows, CH1), jnp.float32), identity,
             jnp.zeros((rows, CH2), jnp.float32)], axis=1)

    out_ref[...] = y + identity


# --------------------------------- wrapper -----------------------------------
def basic_block_forward(x_ncl, params):
    """x_ncl: (N, C_in, L) float32 (PyTorch NCL layout). Returns (N, C_out, L_out)."""
    x2d = jnp.transpose(x_ncl, (0, 2, 1)).reshape(N * L, CIN).astype(jnp.float32)

    gath1 = jnp.asarray(_GATH1_NP)                        # (K+POOL_K, N*LOUT1, N*L)
    gath2 = jnp.asarray(_GATH2_NP)                        # (K, N*LOUT2, N*LOUT1)

    # Packed im2col weights: rows [0, K*CIN) = conv1, rows [W2_OFF, W2_OFF+K*COUT) = conv2.
    w1_mat = jnp.transpose(params["conv1_w"], (2, 1, 0)).reshape(K * CIN, COUT)
    w2_mat = jnp.transpose(params["conv2_w"], (2, 1, 0)).reshape(K * COUT, COUT)
    w_pack = jnp.zeros((W2_OFF + K * COUT, COUT), jnp.float32)
    w_pack = w_pack.at[:K * CIN, :].set(w1_mat).at[W2_OFF:, :].set(w2_mat)

    # Packed affine/bias params: [bn1_w, bn1_b, bn2_w, bn2_b, conv1_b, conv2_b].
    def pad_row(v):
        return jnp.pad(v.astype(jnp.float32), (0, PW - v.shape[0]))
    prm = jnp.stack([pad_row(params["bn1_w"]), pad_row(params["bn1_b"]),
                     pad_row(params["bn2_w"]), pad_row(params["bn2_b"]),
                     pad_row(params["conv1_b"]), pad_row(params["conv2_b"])])

    vmem = pl.BlockSpec(memory_space=pltpu.MemorySpace.VMEM)
    out2d = pl.pallas_call(
        basic_block_kernel,
        out_shape=jax.ShapeDtypeStruct((N * LOUT1, COUT), jnp.float32),
        in_specs=[vmem] * 5,
        out_specs=vmem,
    )(x2d, gath1, gath2, w_pack, prm)
    return jnp.transpose(out2d.reshape(N, LOUT1, COUT), (0, 2, 1))


# ------------------------- pure-JAX reference (NCL) --------------------------
def reference_forward(x, params):
    def bn(v, g, b):
        mu = v.mean(axis=(0, 2), keepdims=True)
        var = ((v - mu) ** 2).mean(axis=(0, 2), keepdims=True)
        return (v - mu) * lax.rsqrt(var + EPS) * g[None, :, None] + b[None, :, None]

    def conv1d_same(v, w, b, stride):
        Lx = v.shape[-1]
        od = (Lx + stride - 1) // stride
        p = max(0, (od - 1) * stride + w.shape[-1] - Lx)
        vp = jnp.pad(v, ((0, 0), (0, 0), (p // 2, p - p // 2)))
        y = lax.conv_general_dilated(vp, w, (stride,), "VALID",
                                     dimension_numbers=("NCH", "OIH", "NCH"))
        return y + b[None, :, None]

    def maxpool_same(v, k):
        p = max(0, k - 1)
        vp = jnp.pad(v, ((0, 0), (0, 0), (p // 2, p - p // 2)))
        return lax.reduce_window(vp, -jnp.inf, lax.max, (1, 1, k), (1, 1, k), "VALID")

    out = x
    if not IS_FIRST_BLOCK:
        if USE_BN:
            out = bn(out, params["bn1_w"], params["bn1_b"])
        out = jnp.maximum(out, 0.0)
    out = conv1d_same(out, params["conv1_w"], params["conv1_b"], STRIDE)
    if USE_BN:
        out = bn(out, params["bn2_w"], params["bn2_b"])
    out = jnp.maximum(out, 0.0)
    out = conv1d_same(out, params["conv2_w"], params["conv2_b"], 1)
    identity = x
    if DOWNSAMPLE:
        identity = maxpool_same(identity, STRIDE)
    if COUT != CIN:
        identity = jnp.pad(identity, ((0, 0), (CH1, CH2), (0, 0)))
    return out + identity


if __name__ == "__main__":
    key = jax.random.PRNGKey(0)
    ks = jax.random.split(key, 9)
    params = {
        "bn1_w": jax.random.normal(ks[0], (CIN,), jnp.float32) * 0.1 + 1.0,
        "bn1_b": jax.random.normal(ks[1], (CIN,), jnp.float32) * 0.1,
        "conv1_w": jax.random.normal(ks[2], (COUT, CIN // GROUPS, K), jnp.float32) * 0.2,
        "conv1_b": jax.random.normal(ks[3], (COUT,), jnp.float32) * 0.1,
        "bn2_w": jax.random.normal(ks[4], (COUT,), jnp.float32) * 0.1 + 1.0,
        "bn2_b": jax.random.normal(ks[5], (COUT,), jnp.float32) * 0.1,
        "conv2_w": jax.random.normal(ks[6], (COUT, COUT // GROUPS, K), jnp.float32) * 0.2,
        "conv2_b": jax.random.normal(ks[7], (COUT,), jnp.float32) * 0.1,
    }
    x = jax.random.normal(ks[8], (N, CIN, L), jnp.float32)

    out = jax.block_until_ready(basic_block_forward(x, params))
    ref = jax.block_until_ready(reference_forward(x, params))
    assert out.shape == (N, COUT, LOUT1), out.shape
    assert bool(jnp.allclose(out, ref, atol=1e-3, rtol=1e-3)), \
        float(jnp.max(jnp.abs(out - ref)))
    print("KERNEL_OK")
</pallas_src>

<mosaic_0001>
module attributes {stable_mosaic.version = 11 : i64} {
  func.func @basic_block_kernel(%arg0: memref<32x4xf32, #tpu.memory_space<vmem>>, %arg1: memref<5x16x32xf32, #tpu.memory_space<vmem>>, %arg2: memref<3x16x16xf32, #tpu.memory_space<vmem>>, %arg3: memref<40x8xf32, #tpu.memory_space<vmem>>, %arg4: memref<6x8xf32, #tpu.memory_space<vmem>>, %arg5: memref<16x8xf32, #tpu.memory_space<vmem>>) attributes {dimension_semantics = [], scalar_prefetch = 0 : i64, scratch_operands = 0 : i64, tpu.core_type = #tpu.core_type<tc>} {
    %c0 = arith.constant 0 : index
    %c0_0 = arith.constant 0 : index
    %0 = vector.load %arg0[%c0, %c0_0] : memref<32x4xf32, #tpu.memory_space<vmem>>, vector<32x4xf32>
    %cst = arith.constant dense<0.000000e+00> : vector<4xf32>
    %1 = vector.multi_reduction <add>, %0, %cst [0] : vector<32x4xf32> to vector<4xf32>
    %2 = vector.shape_cast %1 : vector<4xf32> to vector<1x4xf32>
    %cst_1 = arith.constant 3.125000e-02 : f32
    %3 = vector.broadcast %cst_1 : f32 to vector<1x4xf32>
    %4 = arith.mulf %2, %3 : vector<1x4xf32>
    %5 = arith.mulf %0, %0 : vector<32x4xf32>
    %cst_2 = arith.constant dense<0.000000e+00> : vector<4xf32>
    %6 = vector.multi_reduction <add>, %5, %cst_2 [0] : vector<32x4xf32> to vector<4xf32>
    %7 = vector.shape_cast %6 : vector<4xf32> to vector<1x4xf32>
    %cst_3 = arith.constant 3.125000e-02 : f32
    %8 = vector.broadcast %cst_3 : f32 to vector<1x4xf32>
    %9 = arith.mulf %7, %8 : vector<1x4xf32>
    %10 = arith.mulf %4, %4 : vector<1x4xf32>
    %11 = arith.subf %9, %10 : vector<1x4xf32>
    %12 = vector.broadcast %4 : vector<1x4xf32> to vector<32x4xf32>
    %13 = arith.subf %0, %12 : vector<32x4xf32>
    %cst_4 = arith.constant 9.99999974E-6 : f32
    %14 = vector.broadcast %cst_4 : f32 to vector<1x4xf32>
    %15 = arith.addf %11, %14 : vector<1x4xf32>
    %16 = math.rsqrt %15 : vector<1x4xf32>
    %c0_5 = arith.constant 0 : index
    %c0_6 = arith.constant 0 : index
    %17 = vector.load %arg4[%c0_5, %c0_6] : memref<6x8xf32, #tpu.memory_space<vmem>>, vector<1x4xf32>
    %18 = arith.mulf %16, %17 : vector<1x4xf32>
    %19 = vector.broadcast %18 : vector<1x4xf32> to vector<32x4xf32>
    %20 = arith.mulf %13, %19 : vector<32x4xf32>
    %c1 = arith.constant 1 : index
    %c0_7 = arith.constant 0 : index
    %21 = vector.load %arg4[%c1, %c0_7] : memref<6x8xf32, #tpu.memory_space<vmem>>, vector<1x4xf32>
    %22 = vector.broadcast %21 : vector<1x4xf32> to vector<32x4xf32>
    %23 = arith.addf %20, %22 : vector<32x4xf32>
    %cst_8 = arith.constant 0.000000e+00 : f32
    %24 = vector.broadcast %cst_8 : f32 to vector<32x4xf32>
    %25 = arith.maximumf %23, %24 : vector<32x4xf32>
    %c0_9 = arith.constant 0 : index
    %c0_10 = arith.constant 0 : index
    %c0_11 = arith.constant 0 : index
    %26 = vector.load %arg1[%c0_9, %c0_10, %c0_11] : memref<5x16x32xf32, #tpu.memory_space<vmem>>, vector<1x16x32xf32>
    %27 = vector.shape_cast %26 : vector<1x16x32xf32> to vector<16x32xf32>
    %cst_12 = arith.constant dense<0.000000e+00> : vector<16x4xf32>
    %28 = tpu.matmul %27, %25, %cst_12 {dimension_numbers = #tpu.dot_dimension_numbers<[1], [0], [0], [1], [0, 0, 1, 1], [], []>} : vector<16x32xf32>, vector<32x4xf32>, vector<16x4xf32> -> vector<16x4xf32>
    %c1_13 = arith.constant 1 : index
    %c0_14 = arith.constant 0 : index
    %c0_15 = arith.constant 0 : index
    %29 = vector.load %arg1[%c1_13, %c0_14, %c0_15] : memref<5x16x32xf32, #tpu.memory_space<vmem>>, vector<1x16x32xf32>
    %30 = vector.shape_cast %29 : vector<1x16x32xf32> to vector<16x32xf32>
    %cst_16 = arith.constant dense<0.000000e+00> : vector<16x4xf32>
    %31 = tpu.matmul %30, %25, %cst_16 {dimension_numbers = #tpu.dot_dimension_numbers<[1], [0], [0], [1], [0, 0, 1, 1], [], []>} : vector<16x32xf32>, vector<32x4xf32>, vector<16x4xf32> -> vector<16x4xf32>
    %c2 = arith.constant 2 : index
    %c0_17 = arith.constant 0 : index
    %c0_18 = arith.constant 0 : index
    %32 = vector.load %arg1[%c2, %c0_17, %c0_18] : memref<5x16x32xf32, #tpu.memory_space<vmem>>, vector<1x16x32xf32>
    %33 = vector.shape_cast %32 : vector<1x16x32xf32> to vector<16x32xf32>
    %cst_19 = arith.constant dense<0.000000e+00> : vector<16x4xf32>
    %34 = tpu.matmul %33, %25, %cst_19 {dimension_numbers = #tpu.dot_dimension_numbers<[1], [0], [0], [1], [0, 0, 1, 1], [], []>} : vector<16x32xf32>, vector<32x4xf32>, vector<16x4xf32> -> vector<16x4xf32>
    %35 = tpu.concatenate %28, %31, %34 in 1 : vector<16x4xf32>, vector<16x4xf32>, vector<16x4xf32> -> vector<16x12xf32>
    %c0_20 = arith.constant 0 : index
    %c0_21 = arith.constant 0 : index
    %36 = vector.load %arg3[%c0_20, %c0_21] : memref<40x8xf32, #tpu.memory_space<vmem>>, vector<12x8xf32>
    %cst_22 = arith.constant dense<0.000000e+00> : vector<16x8xf32>
    %37 = tpu.matmul %35, %36, %cst_22 {dimension_numbers = #tpu.dot_dimension_numbers<[1], [0], [0], [1], [0, 0, 1, 1], [], []>} : vector<16x12xf32>, vector<12x8xf32>, vector<16x8xf32> -> vector<16x8xf32>
    %c4 = arith.constant 4 : index
    %c0_23 = arith.constant 0 : index
    %38 = vector.load %arg4[%c4, %c0_23] : memref<6x8xf32, #tpu.memory_space<vmem>>, vector<1x8xf32>
    %39 = vector.broadcast %38 : vector<1x8xf32> to vector<16x8xf32>
    %40 = arith.addf %37, %39 : vector<16x8xf32>
    %cst_24 = arith.constant dense<0.000000e+00> : vector<8xf32>
    %41 = vector.multi_reduction <add>, %40, %cst_24 [0] : vector<16x8xf32> to vector<8xf32>
    %42 = vector.shape_cast %41 : vector<8xf32> to vector<1x8xf32>
    %cst_25 = arith.constant 6.250000e-02 : f32
    %43 = vector.broadcast %cst_25 : f32 to vector<1x8xf32>
    %44 = arith.mulf %42, %43 : vector<1x8xf32>
    %45 = arith.mulf %40, %40 : vector<16x8xf32>
    %cst_26 = arith.constant dense<0.000000e+00> : vector<8xf32>
    %46 = vector.multi_reduction <add>, %45, %cst_26 [0] : vector<16x8xf32> to vector<8xf32>
    %47 = vector.shape_cast %46 : vector<8xf32> to vector<1x8xf32>
    %cst_27 = arith.constant 6.250000e-02 : f32
    %48 = vector.broadcast %cst_27 : f32 to vector<1x8xf32>
    %49 = arith.mulf %47, %48 : vector<1x8xf32>
    %50 = arith.mulf %44, %44 : vector<1x8xf32>
    %51 = arith.subf %49, %50 : vector<1x8xf32>
    %52 = vector.broadcast %44 : vector<1x8xf32> to vector<16x8xf32>
    %53 = arith.subf %40, %52 : vector<16x8xf32>
    %cst_28 = arith.constant 9.99999974E-6 : f32
    %54 = vector.broadcast %cst_28 : f32 to vector<1x8xf32>
    %55 = arith.addf %51, %54 : vector<1x8xf32>
    %56 = math.rsqrt %55 : vector<1x8xf32>
    %c2_29 = arith.constant 2 : index
    %c0_30 = arith.constant 0 : index
    %57 = vector.load %arg4[%c2_29, %c0_30] : memref<6x8xf32, #tpu.memory_space<vmem>>, vector<1x8xf32>
    %58 = arith.mulf %56, %57 : vector<1x8xf32>
    %59 = vector.broadcast %58 : vector<1x8xf32> to vector<16x8xf32>
    %60 = arith.mulf %53, %59 : vector<16x8xf32>
    %c3 = arith.constant 3 : index
    %c0_31 = arith.constant 0 : index
    %61 = vector.load %arg4[%c3, %c0_31] : memref<6x8xf32, #tpu.memory_space<vmem>>, vector<1x8xf32>
    %62 = vector.broadcast %61 : vector<1x8xf32> to vector<16x8xf32>
    %63 = arith.addf %60, %62 : vector<16x8xf32>
    %cst_32 = arith.constant 0.000000e+00 : f32
    %64 = vector.broadcast %cst_32 : f32 to vector<16x8xf32>
    %65 = arith.maximumf %63, %64 : vector<16x8xf32>
    %c0_33 = arith.constant 0 : index
    %c0_34 = arith.constant 0 : index
    %c0_35 = arith.constant 0 : index
    %66 = vector.load %arg2[%c0_33, %c0_34, %c0_35] : memref<3x16x16xf32, #tpu.memory_space<vmem>>, vector<1x16x16xf32>
    %67 = vector.shape_cast %66 : vector<1x16x16xf32> to vector<16x16xf32>
    %cst_36 = arith.constant dense<0.000000e+00> : vector<16x8xf32>
    %68 = tpu.matmul %67, %65, %cst_36 {dimension_numbers = #tpu.dot_dimension_numbers<[1], [0], [0], [1], [0, 0, 1, 1], [], []>} : vector<16x16xf32>, vector<16x8xf32>, vector<16x8xf32> -> vector<16x8xf32>
    %c1_37 = arith.constant 1 : index
    %c0_38 = arith.constant 0 : index
    %c0_39 = arith.constant 0 : index
    %69 = vector.load %arg2[%c1_37, %c0_38, %c0_39] : memref<3x16x16xf32, #tpu.memory_space<vmem>>, vector<1x16x16xf32>
    %70 = vector.shape_cast %69 : vector<1x16x16xf32> to vector<16x16xf32>
    %cst_40 = arith.constant dense<0.000000e+00> : vector<16x8xf32>
    %71 = tpu.matmul %70, %65, %cst_40 {dimension_numbers = #tpu.dot_dimension_numbers<[1], [0], [0], [1], [0, 0, 1, 1], [], []>} : vector<16x16xf32>, vector<16x8xf32>, vector<16x8xf32> -> vector<16x8xf32>
    %c2_41 = arith.constant 2 : index
    %c0_42 = arith.constant 0 : index
    %c0_43 = arith.constant 0 : index
    %72 = vector.load %arg2[%c2_41, %c0_42, %c0_43] : memref<3x16x16xf32, #tpu.memory_space<vmem>>, vector<1x16x16xf32>
    %73 = vector.shape_cast %72 : vector<1x16x16xf32> to vector<16x16xf32>
    %cst_44 = arith.constant dense<0.000000e+00> : vector<16x8xf32>
    %74 = tpu.matmul %73, %65, %cst_44 {dimension_numbers = #tpu.dot_dimension_numbers<[1], [0], [0], [1], [0, 0, 1, 1], [], []>} : vector<16x16xf32>, vector<16x8xf32>, vector<16x8xf32> -> vector<16x8xf32>
    %75 = tpu.concatenate %68, %71, %74 in 1 : vector<16x8xf32>, vector<16x8xf32>, vector<16x8xf32> -> vector<16x24xf32>
    %c16 = arith.constant 16 : index
    %c0_45 = arith.constant 0 : index
    %76 = vector.load %arg3[%c16, %c0_45] : memref<40x8xf32, #tpu.memory_space<vmem>>, vector<24x8xf32>
    %cst_46 = arith.constant dense<0.000000e+00> : vector<16x8xf32>
    %77 = tpu.matmul %75, %76, %cst_46 {dimension_numbers = #tpu.dot_dimension_numbers<[1], [0], [0], [1], [0, 0, 1, 1], [], []>} : vector<16x24xf32>, vector<24x8xf32>, vector<16x8xf32> -> vector<16x8xf32>
    %c5 = arith.constant 5 : index
    %c0_47 = arith.constant 0 : index
    %78 = vector.load %arg4[%c5, %c0_47] : memref<6x8xf32, #tpu.memory_space<vmem>>, vector<1x8xf32>
    %79 = vector.broadcast %78 : vector<1x8xf32> to vector<16x8xf32>
    %80 = arith.addf %77, %79 : vector<16x8xf32>
    %c3_48 = arith.constant 3 : index
    %c0_49 = arith.constant 0 : index
    %c0_50 = arith.constant 0 : index
    %81 = vector.load %arg1[%c3_48, %c0_49, %c0_50] : memref<5x16x32xf32, #tpu.memory_space<vmem>>, vector<1x16x32xf32>
    %82 = vector.shape_cast %81 : vector<1x16x32xf32> to vector<16x32xf32>
    %cst_51 = arith.constant dense<0.000000e+00> : vector<16x4xf32>
    %83 = tpu.matmul %82, %0, %cst_51 {dimension_numbers = #tpu.dot_dimension_numbers<[1], [0], [0], [1], [0, 0, 1, 1], [], []>} : vector<16x32xf32>, vector<32x4xf32>, vector<16x4xf32> -> vector<16x4xf32>
    %c4_52 = arith.constant 4 : index
    %c0_53 = arith.constant 0 : index
    %c0_54 = arith.constant 0 : index
    %84 = vector.load %arg1[%c4_52, %c0_53, %c0_54] : memref<5x16x32xf32, #tpu.memory_space<vmem>>, vector<1x16x32xf32>
    %85 = vector.shape_cast %84 : vector<1x16x32xf32> to vector<16x32xf32>
    %cst_55 = arith.constant dense<0.000000e+00> : vector<16x4xf32>
    %86 = tpu.matmul %85, %0, %cst_55 {dimension_numbers = #tpu.dot_dimension_numbers<[1], [0], [0], [1], [0, 0, 1, 1], [], []>} : vector<16x32xf32>, vector<32x4xf32>, vector<16x4xf32> -> vector<16x4xf32>
    %87 = arith.maximumf %83, %86 : vector<16x4xf32>
    %cst_56 = arith.constant 0.000000e+00 : f32
    %88 = vector.broadcast %cst_56 : f32 to vector<16x2xf32>
    %cst_57 = arith.constant 0.000000e+00 : f32
    %89 = vector.broadcast %cst_57 : f32 to vector<16x2xf32>
    %90 = tpu.concatenate %88, %87, %89 in 1 : vector<16x2xf32>, vector<16x4xf32>, vector<16x2xf32> -> vector<16x8xf32>
    %91 = arith.addf %80, %90 : vector<16x8xf32>
    %c0_58 = arith.constant 0 : index
    %c0_59 = arith.constant 0 : index
    %92 = vector.load %arg5[%c0_58, %c0_59] : memref<16x8xf32, #tpu.memory_space<vmem>>, vector<16x8xf32>
    tpu.vector_store %arg5[%c0_58, %c0_59], %91 {strides = array<i32>} : memref<16x8xf32, #tpu.memory_space<vmem>>, vector<16x8xf32>,
    return
  }
}

</mosaic_0001>

<bundles_post_ra>
// kernel: tpu_custom_call.1
= control target key start
LH: loop header
LB: loop body
LE: loop exit
PB: predicated region body
PF: predicated region fallthrough
CT: control target
= control target key end

     0   :  { %10 = vsyncpa [#allocation3], 0  ;;  %s621_s21 = smov [#allocation2]   ;;  %s622_s23 = smov 128   ;;  %s806_s0 = inlined_call_operand.vmem [shape: f32[32,4], index: 0, kind: input, shape index: {}]   ;;  %s807_s1 = inlined_call_operand.hbm [shape: f32[5,16,32], index: 1, kind: input, shape index: {}]   ;;  %s808_s2 = inlined_call_operand.vmem [shape: f32[3,16,16], index: 2, kind: input, shape index: {}]   ;;  %s809_s3 = inlined_call_operand.vmem [shape: f32[40,8], index: 3, kind: input, shape index: {}]   ;;  %s810_s4 = inlined_call_operand.vmem [shape: f32[6,8], index: 4, kind: input, shape index: {}]   ;;  %s811_s5 = inlined_call_operand.vmem [shape: f32[16,8], index: 5, kind: output, shape index: {}]  }
   0x1   :  { %s17_s20 = sshll.u32 %s807_s1, 4  ;;  %s19_s22 = sshll.u32 %s621_s21, 4  ;;  %s18_s20 = int_to_ptr.hbm [resolvable:$true] %s17_s20  ;;  %s20_s22 = int_to_ptr.vmem [resolvable:$true] %s19_s22 }
   0x2   :  { %s623_s24 = smov 8  }
   0x3   :  { %25 = dma.hbm_to_vmem [thread:$0]  %s18_s20, 1280, %s20_s22, [#allocation3], %s622_s23, %s622_s23, %s623_s24  }
   0x4   :  { %619 = dma.done.wait [#allocation3], 1280  }
   0x5   :  { %620 = vsyncadd [#allocation3], 4294966016  ;;  %vm40_vm0 = vcmask 31744   ;;  %v664_v0 = vld [vmem:[%s806_s0] sm:$0xff]  ;;  %v669_v1 = vld [vmem:[%s806_s0 + $0x8] sm:$0xff]  ;;  %vm109_vm4 = vcmask 261120  }
   0x6   :  { %v674_v2 = vld [vmem:[%s806_s0 + $0x10] sm:$0xff]  ;;  %v679_v3 = vld [vmem:[%s806_s0 + $0x18] sm:$0xff]  ;;  %v41_v4 = vsel %vm40_vm0, %v664_v0, 0.0  ;;  %v42_v5 = vsel %vm40_vm0, %v669_v1, 0.0  ;;  %v55_v7 = vmul.f32 %v664_v0, %v664_v0  ;;  %v56_v9 = vmul.f32 %v669_v1, %v669_v1  ;;  %v90_v45 = vld [vmem:[%s810_s4] sm:$0x1] }
   0x7   :  { %v44_v6 = vsel %vm40_vm0, %v674_v2, 0.0  ;;  %v43_v8 = vadd.f32 %v42_v5, %v41_v4  ;;  %v57_v10 = vmul.f32 %v674_v2, %v674_v2  ;;  %v46_v11 = vsel %vm40_vm0, %v679_v3, 0.0  ;;  %v587_v53 = vld [vmem:[%s810_s4 + $0x1] ss:$0 sm:$0xff]  ;;  %s624_s12 = smov 4  }
   0x8   :  { %v58_v12 = vmul.f32 %v679_v3, %v679_v3  ;;  %v59_v13 = vsel %vm40_vm0, %v55_v7, 0.0  ;;  %v60_v15 = vsel %vm40_vm0, %v56_v9, 0.0  ;;  %v172_v7 = vld [vmem:[#allocation2 + $0x20] sm:$0xff]  ;;  %v140_v9 = vld [vmem:[#allocation2 + $0x10] sm:$0xff]  ;;  %vm235_vm5 = vcmask 1043456  }
   0x9   :  { %v45_v14 = vadd.f32 %v44_v6, %v43_v8  ;;  %v62_v16 = vsel %vm40_vm0, %v57_v10, 0.0  ;;  %v61_v17 = vadd.f32 %v60_v15, %v59_v13  ;;  %v108_v6 = vld [vmem:[#allocation2 + $0x8] sm:$0xff]  ;;  %v107_v8 = vld [vmem:[#allocation2] sm:$0xff]  ;;  %vm221_vm6 = vcmask 64512  }
   0xa   :  { %v64_v19 = vsel %vm40_vm0, %v58_v12, 0.0  ;;  %v173_v10 = vld [vmem:[#allocation2 + $0x28] sm:$0xff]  ;;  %vm228_vm7 = vcmask 97280   ;;  %vm312_vm11 = vcmask 130048   ;;  %vm431_vm12 = vcmask 195584  }
   0xb   :  { %v47_v18 = vadd.f32 %v46_v11, %v45_v14  ;;  %v63_v20 = vadd.f32 %v62_v16, %v61_v17  ;;  %v141_v11 = vld [vmem:[#allocation2 + $0x18] sm:$0xff]  ;;  %v225_v12 = vld [vmem:[%s809_s3 + $0x8] sm:$0xf]  ;;  %vm535_vm13 = vcmask 15360   ;;  %vm538_vm14 = vcmask 48128  }
   0xc   :  { %579 = vmatpush.msk.msra.mxu3 %vm235_vm5, %v225_v12 }
   0xd   :  { %v48_v21 = vrot.slane %v47_v18, 4  ;;  %v65_v22 = vadd.f32 %v64_v19, %v63_v20 }
   0xf   :  { %v49_v23 = vadd.f32 %v48_v21, %v47_v18  ;;  %v66_v24 = vrot.slane %v65_v22, 4  ;;  %v224_v18 = vld [vmem:[%s809_s3] sm:$0xff] }
  0x10   :  { %580 = vmatpush.msra.mxu3 %v224_v18 }
  0x11   :  { %v50_v25 = vrot.slane %v49_v23, 2  ;;  %v67_v26 = vadd.f32 %v66_v24, %v65_v22 }
  0x13   :  { %v51_v27 = vadd.f32 %v50_v25, %v49_v23  ;;  %v68_v28 = vrot.slane %v67_v26, 2 }
  0x15   :  { %v52_v29 = vrot.slane %v51_v27, 1  ;;  %v69_v30 = vadd.f32 %v68_v28, %v67_v26  ;;  %v588_v28 = vld [vmem:[%s810_s4 + $0x4] ss:$0 sm:$0xff] }
  0x17   :  { %v53_v31 = vadd.f32 %v52_v29, %v51_v27  ;;  %v70_v32 = vrot.slane %v69_v30, 1 }
  0x19   :  { %v54_v33 = vmul.f32 0.03125, %v53_v31  ;;  %v71_v34 = vadd.f32 %v70_v32, %v69_v30 }
  0x1b   :  { %v73_v35 = vmul.f32 %v54_v33, %v54_v33  ;;  %v72_v36 = vmul.f32 0.03125, %v71_v34  ;;  %v78_v46 = vsub.f32 %v679_v3, %v54_v33  ;;  %v77_v49 = vsub.f32 %v674_v2, %v54_v33 }
  0x1c   :  { %v76_v50 = vsub.f32 %v669_v1, %v54_v33  ;;  %v75_v51 = vsub.f32 %v664_v0, %v54_v33 }
  0x1d   :  { %v74_v37 = vsub.f32 %v72_v36, %v73_v35 }
  0x1f   :  { %v79_v38 = vadd.f32 1e-05, %v74_v37 }
  0x21   :  { %591 = vrsqrt.f32 %v79_v38  ;;  %vm86_vm1 = vweird.f32 %v79_v38 }
  0x27   :  { %v592_v39 = vpop.eup %591 }
  0x28   :  { %v81_v40 = vmul.f32 %v592_v39, %v79_v38  ;;  %vm87_vm2 = vweird.f32 %v592_v39 }
  0x29   :  { %vm88_vm3 = vmor %vm86_vm1, %vm87_vm2 }
  0x2a   :  { %v82_v41 = vmul.f32 %v592_v39, %v81_v40 }
  0x2c   :  { %v83_v42 = vmul.f32 0.5, %v82_v41 }
  0x2e   :  { %v84_v43 = vsub.f32 1.5, %v83_v42 }
  0x30   :  { %v85_v44 = vmul.f32 %v592_v39, %v84_v43 }
  0x32   :  { %v89_v47 = vsel %vm88_vm3, %v592_v39, %v85_v44 }
  0x33   :  { %v91_v48 = vmul.f32 %v90_v45, %v89_v47 }
  0x35   :  { %v92_v52 = vperm.slane %v91_v48, 0 }
  0x37   :  { %v96_v54 = vmul.f32 %v92_v52, %v78_v46  ;;  %v95_v55 = vmul.f32 %v92_v52, %v77_v49  ;;  %v94_v56 = vmul.f32 %v92_v52, %v76_v50  ;;  %v93_v57 = vmul.f32 %v92_v52, %v75_v51 }
  0x39   :  { %v102_v58 = vadd.f32 %v587_v53, %v96_v54  ;;  %v101_v59 = vadd.f32 %v587_v53, %v95_v55  ;;  %v100_v60 = vadd.f32 %v587_v53, %v94_v56  ;;  %v99_v63 = vadd.f32 %v587_v53, %v93_v57 }
  0x3b   :  { %v106_v61 = vmax.f32 %v102_v58, 0.0  ;;  %v105_v62 = vmax.f32 %v101_v59, 0.0  ;;  %v104_v4 = vmax.f32 %v100_v60, 0.0  ;;  %v103_v5 = vmax.f32 %v99_v63, 0.0 }
  0x3d   :  { %575 = vmatpush.msra.mxu1 %v106_v61  ;;  %192 = vmatpush.msra.mxu2 %v106_v61 }
  0x3e   :  { %128 = vmatpush.msra.mxu0 %v106_v61 }
  0x3f   :  { %576 = vmatpush.msra.mxu1 %v105_v62  ;;  %193 = vmatpush.msra.mxu2 %v105_v62 }
  0x40   :  { %129 = vmatpush.msra.mxu0 %v105_v62 }
  0x41   :  { %577 = vmatpush.msra.mxu1 %v104_v4  ;;  %194 = vmatpush.msra.mxu2 %v104_v4 }
  0x42   :  { %130 = vmatpush.msra.mxu0 %v104_v4 }
  0x43   :  { %578 = vmatpush.msra.mxu1 %v103_v5  ;;  %195 = vmatpush.msra.mxu2 %v103_v5 }
  0x44   :  { %551 = vmatmul.msk.f32.vlgmr.msra.gmra.mxu1 %vm109_vm4, %v108_v6  ;;  %554 = vmatmul.msk.f32.vlgmr.msra.gmra.mxu2 %vm109_vm4, %v172_v7 }
  0x45   :  { %160 = vmatpush.msrb.mxu1 %v106_v61  ;;  %131 = vmatpush.msra.mxu0 %v103_v5 }
  0x46   :  { %550 = vmatmul.msk.f32.vlgmr.msra.gmra.mxu0 %vm109_vm4, %v107_v8  ;;  %556 = vmatpush.msk.msrb.mxu2 %vm235_vm5, %v225_v12 }
  0x47   :  { %161 = vmatpush.msrb.mxu1 %v105_v62 }
  0x48   :  { %254 = vmatpush.msrb.mxu2 %v224_v18  ;;  %v565_v18 = vld [vmem:[%s808_s2 + $0x20] sm:$0xff] }
  0x49   :  { %162 = vmatpush.msrb.mxu1 %v104_v4  ;;  %v299_v4 = vld [vmem:[%s810_s4 + $0x2] sm:$0x1] }
  0x4b   :  { %163 = vmatpush.msrb.mxu1 %v103_v5 }
  0x4c   :  { %552 = vmatmul.msk.f32.vlgmr.msrb.gmra.mxu1 %vm109_vm4, %v140_v9  ;;  %555 = vmatmul.msk.f32.gmra.mxu2 %vm109_vm4, %v173_v10  ;;  %v589_v9 = vld [vmem:[%s810_s4 + $0x3] ss:$0 sm:$0xff] }
  0x54   :  { %553 = vmatmul.msk.f32.gmra.mxu1 %vm109_vm4, %v141_v11 }
  0xc1   :  { %v136_v13 = vpop.f32.mrf.mxu1 }
  0xc3   :  { %v133_v19 = vpop.f32.mrf.mxu0 }
  0xc7   :  { %v197_v14 = vpop.f32.mrf.mxu2 }
  0xc8   :  { %213 = vrot.lane.b32.xlu1 %v197_v14, %s623_s24 }
  0xc9   :  { %v165_v15 = vpop.f32.mrf.mxu1 }
  0xca   :  { %205 = vrot.lane.b32.xlu0 %v165_v15, %s624_s12 }
  0xcf   :  { %v200_v16 = vpop.f32.mrf.mxu2 }
  0xd0   :  { %215 = vrot.lane.b32.xlu1 %v200_v16, %s623_s24 }
  0xd1   :  { %v168_v17 = vpop.f32.mrf.mxu1 }
  0xd2   :  { %207 = vrot.lane.b32.xlu0 %v168_v17, %s624_s12  ;;  %v561_v17 = vld [vmem:[%s808_s2 + $0x10] sm:$0xff] }
 0x13a   :  { %v214_v20 = vpop.permute.xlu1 %213 }
 0x13c   :  { %v206_v21 = vpop.permute.xlu0 %205 }
 0x13d   :  { %v219_v22 = vsel %vm40_vm0, %v133_v19, %v206_v21  ;;  %v310_v19 = vld [vmem:[%s808_s2] sm:$0xff]  ;;  %v566_v21 = vld [vmem:[%s808_s2 + $0x28] sm:$0xff] }
 0x13e   :  { %v222_v23 = vsel %vm221_vm6, %v219_v22, %v214_v20  ;;  %v562_v20 = vld [vmem:[%s808_s2 + $0x18] sm:$0xff]  ;;  %v311_v22 = vld [vmem:[%s808_s2 + $0x8] sm:$0xff]  ;;  %s625_s2 = smov 16  }
 0x13f   :  { %557 = vmatmul.msk.f32.vlgmr.msrb.gmra.mxu2 %vm228_vm7, %v222_v23  ;;  %v463_v23 = vld [vmem:[#allocation2 + $0x38] sm:$0xff] }
 0x142   :  { %v216_v24 = vpop.permute.xlu1 %215 }
 0x144   :  { %v208_v25 = vpop.permute.xlu0 %207 }
 0x145   :  { %v220_v26 = vsel %vm40_vm0, %v136_v13, %v208_v25 }
 0x146   :  { %v223_v27 = vsel %vm221_vm6, %v220_v26, %v216_v24 }
 0x147   :  { %558 = vmatmul.msk.f32.vlgmr.msra.gmra.mxu3 %vm228_vm7, %v223_v27  ;;  %v428_v27 = vld [vmem:[%s809_s3 + $0x20] sm:$0xff] }
 0x148   :  { %451 = vmatpush.msra.mxu2 %v428_v27 }
 0x1c2   :  { %v256_v29 = vpop.f32.mrf.mxu2 }
 0x1c3   :  { %v257_v30 = vadd.f32 %v588_v28, %v256_v29  ;;  %v426_v29 = vld [vmem:[%s809_s3 + $0x10] sm:$0xff] }
 0x1c5   :  { %v272_v32 = vmul.f32 %v257_v30, %v257_v30  ;;  %v262_v34 = vsel %vm221_vm6, %v257_v30, 0.0 }
 0x1c7   :  { %v274_v38 = vsel %vm221_vm6, %v272_v32, 0.0 }
 0x1ca   :  { %v259_v31 = vpop.f32.mrf.mxu3 }
 0x1cb   :  { %v260_v33 = vadd.f32 %v588_v28, %v259_v31  ;;  %v427_v28 = vld [vmem:[%s809_s3 + $0x18] sm:$0xff] }
 0x1cc   :  { %452 = vmatpush.msra.mxu2 %v427_v28 }
 0x1cd   :  { %v263_v35 = vsel %vm221_vm6, %v260_v33, 0.0  ;;  %v273_v36 = vmul.f32 %v260_v33, %v260_v33 }
 0x1ce   :  { %v264_v37 = vadd.f32 %v263_v35, %v262_v34  ;;  %453 = vmatpush.msra.mxu2 %v426_v29 }
 0x1cf   :  { %v275_v39 = vsel %vm221_vm6, %v273_v36, 0.0 }
 0x1d0   :  { %v265_v40 = vrot.slane %v264_v37, 4  ;;  %v276_v41 = vadd.f32 %v275_v39, %v274_v38 }
 0x1d2   :  { %v266_v42 = vadd.f32 %v265_v40, %v264_v37  ;;  %v277_v43 = vrot.slane %v276_v41, 4 }
 0x1d4   :  { %v267_v44 = vrot.slane %v266_v42, 2  ;;  %v278_v45 = vadd.f32 %v277_v43, %v276_v41 }
 0x1d6   :  { %v268_v46 = vadd.f32 %v267_v44, %v266_v42  ;;  %v279_v47 = vrot.slane %v278_v45, 2 }
 0x1d8   :  { %v269_v48 = vrot.slane %v268_v46, 1  ;;  %v280_v49 = vadd.f32 %v279_v47, %v278_v45  ;;  %v590_v47 = vld [vmem:[%s810_s4 + $0x5] ss:$0 sm:$0xff] }
 0x1da   :  { %v270_v50 = vadd.f32 %v269_v48, %v268_v46  ;;  %v281_v51 = vrot.slane %v280_v49, 1 }
 0x1dc   :  { %v271_v52 = vmul.f32 0.0625, %v270_v50  ;;  %v282_v53 = vadd.f32 %v281_v51, %v280_v49 }
 0x1de   :  { %v283_v54 = vmul.f32 0.0625, %v282_v53  ;;  %v284_v55 = vmul.f32 %v271_v52, %v271_v52  ;;  %v287_v7 = vsub.f32 %v260_v33, %v271_v52  ;;  %v286_v10 = vsub.f32 %v257_v30, %v271_v52 }
 0x1e0   :  { %v285_v56 = vsub.f32 %v283_v54, %v284_v55 }
 0x1e2   :  { %v288_v57 = vadd.f32 1e-05, %v285_v56 }
 0x1e4   :  { %593 = vrsqrt.f32 %v288_v57  ;;  %vm295_vm9 = vweird.f32 %v288_v57 }
 0x1ea   :  { %v594_v58 = vpop.eup %593 }
 0x1eb   :  { %v290_v59 = vmul.f32 %v594_v58, %v288_v57  ;;  %vm296_vm8 = vweird.f32 %v594_v58 }
 0x1ec   :  { %vm297_vm10 = vmor %vm295_vm9, %vm296_vm8 }
 0x1ed   :  { %v291_v60 = vmul.f32 %v594_v58, %v290_v59 }
 0x1ef   :  { %v292_v61 = vmul.f32 0.5, %v291_v60 }
 0x1f1   :  { %v293_v62 = vsub.f32 1.5, %v292_v61 }
 0x1f3   :  { %v294_v63 = vmul.f32 %v594_v58, %v293_v62 }
 0x1f5   :  { %v298_v5 = vsel %vm297_vm10, %v594_v58, %v294_v63 }
 0x1f6   :  { %v300_v6 = vmul.f32 %v299_v4, %v298_v5 }
 0x1f8   :  { %v301_v8 = vperm.slane %v300_v6, 0 }
 0x1fa   :  { %v303_v11 = vmul.f32 %v301_v8, %v287_v7  ;;  %v302_v12 = vmul.f32 %v301_v8, %v286_v10 }
 0x1fc   :  { %v307_v13 = vadd.f32 %v589_v9, %v303_v11  ;;  %v306_v14 = vadd.f32 %v589_v9, %v302_v12 }
 0x1fe   :  { %v309_v15 = vmax.f32 %v307_v13, 0.0  ;;  %v308_v16 = vmax.f32 %v306_v14, 0.0 }
 0x200   :  { %333 = vmatpush.msrb.mxu3 %v309_v15  ;;  %365 = vmatpush.msrb.mxu0 %v309_v15 }
 0x201   :  { %397 = vmatpush.msra.mxu1 %v309_v15 }
 0x202   :  { %334 = vmatpush.msrb.mxu3 %v308_v16  ;;  %366 = vmatpush.msrb.mxu0 %v308_v16 }
 0x203   :  { %398 = vmatpush.msra.mxu1 %v308_v16  ;;  %563 = vmatmul.msk.f32.vlgmr.msrb.gmra.mxu0 %vm312_vm11, %v561_v17 }
 0x204   :  { %567 = vmatmul.msk.f32.vlgmr.msra.gmra.mxu1 %vm312_vm11, %v565_v18  ;;  %559 = vmatmul.msk.f32.vlgmr.msrb.gmra.mxu3 %vm312_vm11, %v310_v19 }
 0x205   :  { %482 = vmatpush.msra.mxu3 %v679_v3  ;;  %514 = vmatpush.msra.mxu0 %v679_v3  ;;  %v494_v3 = vld [vmem:[#allocation2 + $0x40] sm:$0xff] }
 0x207   :  { %483 = vmatpush.msra.mxu3 %v674_v2  ;;  %515 = vmatpush.msra.mxu0 %v674_v2  ;;  %v462_v2 = vld [vmem:[#allocation2 + $0x30] sm:$0xff] }
 0x209   :  { %484 = vmatpush.msra.mxu3 %v669_v1  ;;  %516 = vmatpush.msra.mxu0 %v669_v1  ;;  %v495_v1 = vld [vmem:[#allocation2 + $0x48] sm:$0xff] }
 0x20b   :  { %564 = vmatmul.msk.f32.gmra.mxu0 %vm312_vm11, %v562_v20  ;;  %485 = vmatpush.msra.mxu3 %v664_v0 }
 0x20c   :  { %568 = vmatmul.msk.f32.gmra.mxu1 %vm312_vm11, %v566_v21  ;;  %560 = vmatmul.msk.f32.gmra.mxu3 %vm312_vm11, %v311_v22 }
 0x20d   :  { %517 = vmatpush.msra.mxu0 %v664_v0 }
 0x213   :  { %573 = vmatmul.msk.f32.vlgmr.msra.gmra.mxu0 %vm109_vm4, %v494_v3 }
 0x214   :  { %571 = vmatmul.msk.f32.vlgmr.msra.gmra.mxu3 %vm109_vm4, %v462_v2 }
 0x21b   :  { %574 = vmatmul.msk.f32.gmra.mxu0 %vm109_vm4, %v495_v1 }
 0x21c   :  { %572 = vmatmul.msk.f32.gmra.mxu3 %vm109_vm4, %v463_v23 }
 0x280   :  { %v368_v24 = vpop.f32.mrf.mxu0 }
 0x281   :  { %408 = vrot.lane.b32.xlu2 %v368_v24, %s623_s24  ;;  %v400_v25 = vpop.f32.mrf.mxu1 }
 0x287   :  { %v336_v30 = vpop.f32.mrf.mxu3 }
 0x288   :  { %v371_v26 = vpop.f32.mrf.mxu0 }
 0x289   :  { %416 = vrot.lane.b32.xlu2 %v400_v25, %s625_s2  ;;  %v403_v0 = vpop.f32.mrf.mxu1  ;;  %410 = vrot.lane.b32.xlu0 %v371_v26, %s623_s24  ;;  %s626_s24 = smov 2  }
 0x28a   :  { %418 = vrot.lane.b32.xlu1 %v403_v0, %s625_s2 }
 0x28f   :  { %v339_v32 = vpop.f32.mrf.mxu3 }
 0x290   :  { %v519_v37 = vpop.f32.mrf.mxu0 }
 0x297   :  { %v487_v36 = vpop.f32.mrf.mxu3 }
 0x298   :  { %v525_v38 = vmax.f32 %v487_v36, %v519_v37  ;;  %v522_v40 = vpop.f32.mrf.mxu0 }
 0x29a   :  { %529 = vrot.lane.b32.xlu2 %v525_v38, %s626_s24 }
 0x29f   :  { %v490_v39 = vpop.f32.mrf.mxu3 }
 0x2a0   :  { %v526_v41 = vmax.f32 %v490_v39, %v522_v40 }
 0x2a2   :  { %531 = vrot.lane.b32.xlu0 %v526_v41, %s626_s24 }
 0x2db   :  { %v409_v31 = vpop.permute.xlu2 %408 }
 0x2dc   :  { %v422_v33 = vsel %vm221_vm6, %v336_v30, %v409_v31 }
 0x2e3   :  { %v417_v34 = vpop.permute.xlu2 %416 }
 0x2e4   :  { %v424_v35 = vsel %vm312_vm11, %v422_v33, %v417_v34 }
 0x2e5   :  { %569 = vmatmul.msk.f32.vlgmr.msra.gmra.mxu2 %vm431_vm12, %v424_v35 }
 0x2f4   :  { %v530_v46 = vpop.permute.xlu2 %529 }
 0x2f5   :  { %v536_v48 = vsel %vm535_vm13, 0.0, %v530_v46 }
 0x2f6   :  { %v539_v51 = vsel %vm538_vm14, %v536_v48, 0.0 }
 0x2fb   :  { %v411_v42 = vpop.permute.xlu0 %410 }
 0x2fc   :  { %v423_v43 = vsel %vm221_vm6, %v339_v32, %v411_v42  ;;  %v419_v44 = vpop.permute.xlu1 %418 }
 0x2fd   :  { %v425_v45 = vsel %vm312_vm11, %v423_v43, %v419_v44 }
 0x2fe   :  { %570 = vmatmul.msk.f32.gmra.mxu2 %vm431_vm12, %v425_v45 }
 0x314   :  { %v532_v53 = vpop.permute.xlu0 %531 }
 0x315   :  { %v537_v54 = vsel %vm535_vm13, 0.0, %v532_v53 }
 0x316   :  { %v540_v55 = vsel %vm538_vm14, %v537_v54, 0.0 }
 0x368   :  { %v455_v49 = vpop.f32.mrf.mxu2 }
 0x369   :  { %v456_v50 = vadd.f32 %v590_v47, %v455_v49 }
 0x36b   :  { %v541_v52 = vadd.f32 %v539_v51, %v456_v50 }
 0x36d   :  { %543 = vst.msk [vmem:[%s811_s5] sm:$0xff] %vm221_vm6, %v541_v52 }
 0x381   :  { %v458_v56 = vpop.f32.mrf.mxu2 }
 0x382   :  { %v459_v57 = vadd.f32 %v590_v47, %v458_v56 }
 0x384   :  { %v542_v58 = vadd.f32 %v540_v55, %v459_v57 }
 0x386   :  { %544 = vst.msk [vmem:[%s811_s5 + $0x8] sm:$0xff] %vm221_vm6, %v542_v58 }
 0x387   :  { %549 = vsyncpa [#allocation3], 1 }

</bundles_post_ra>
